<compile_context>
chip_gen: v5e
topology: v5e:2x2
jax: 0.10.0
libtpu: 0.0.40
codegen_flags: <defaults>
</compile_context>

<pallas_src>
import jax
import jax.numpy as jnp
from jax.experimental import pallas as pl
from jax.experimental.pallas import tpu as pltpu

# ---- problem sizes ---------------------------------------------------------
H = 768        # DNABERT2 hidden size (pooler output width)
H1 = 20        # first linear output features
NCLS = 2       # number of classes

# lane-padded widths (zero padding provably contributes nothing)
H1_PAD = 128
OUT_PAD = 128


def cls_head_kernel(x_ref, w1_ref, b1_ref, w2_ref, b2_ref, out_ref):
    """out = ReLU(x @ W1 + b1) @ W2 + b2   (Dropout(0.5) is eval-mode identity)."""
    x = x_ref[...].astype(jnp.bfloat16)                      # no-op for bf16 input
    h = jnp.dot(x, w1_ref[...],
                preferred_element_type=jnp.float32)          # [M, 128] f32 acc (MXU)
    h = jnp.maximum(h + b1_ref[...], 0.0)                    # f32 bias + ReLU (VPU)
    o = jnp.dot(h.astype(jnp.bfloat16), w2_ref[...],
                preferred_element_type=jnp.float32)          # [M, 128] f32 acc (MXU)
    out_ref[...] = (o + b2_ref[...]).astype(out_ref.dtype)   # bf16, lane-dense store


def prepare_params(w1, b1, w2, b2):
    """One-time parameter prep (hoisted out of the hot path).

    Weights are zero-padded to lane-friendly widths and stored as bf16
    (MXU-native input, halves HBM->VMEM bytes); biases stay f32 (added into
    the f32 accumulator).
    """
    w1p = jnp.zeros((H, H1_PAD), jnp.bfloat16).at[:, :H1].set(
        w1.astype(jnp.bfloat16))
    b1p = jnp.zeros((1, H1_PAD), jnp.float32).at[:, :H1].set(b1)
    w2p = jnp.zeros((H1_PAD, OUT_PAD), jnp.bfloat16).at[:H1, :NCLS].set(
        w2.astype(jnp.bfloat16))
    b2p = jnp.zeros((1, OUT_PAD), jnp.float32).at[:, :NCLS].set(b2)
    return jax.block_until_ready((w1p, b1p, w2p, b2p))


def _pick_tm(M, *, tm_cap=512, min_tiles=2):
    """Row-tile size: cap at 512 (≈85% of HBM roofline, amortizes per-step
    overhead on single-TC v5e/v6e) but keep at least `min_tiles` grid tiles so
    the 'parallel' axis shards across both v7x TensorCores."""
    tm = -(-M // min_tiles)            # cdiv(M, min_tiles)
    tm = ((tm + 127) // 128) * 128     # round up to sublane/MXU-friendly 128
    return max(128, min(tm_cap, tm))


def dnabert2_head(x, w1p, b1p, w2p, b2p, *, tm=None):
    """x: [M, 768] pooled representation, preferably bf16 straight from the
    encoder (f32 also accepted; cast happens in-kernel, not as a standalone op).

    Returns lane-padded bf16 logits [M, 128]; the valid classes are columns
    [:2] (padding columns are exactly zero).  Slice in the consumer.
    """
    M = x.shape[0]
    if tm is None:
        tm = _pick_tm(M)

    if M <= tm:
        # Small batch: one full-VMEM invocation, no grid -> no double-buffer
        # allocations and no pipeline prologue/epilogue for a one-shot kernel.
        vmem = pl.BlockSpec(memory_space=pltpu.MemorySpace.VMEM)
        return pl.pallas_call(
            cls_head_kernel,
            out_shape=jax.ShapeDtypeStruct((M, OUT_PAD), jnp.bfloat16),
            in_specs=[vmem, vmem, vmem, vmem, vmem],
            out_specs=vmem,
        )(x, w1p, b1p, w2p, b2p)

    # Batched path: tile pooled rows along a "parallel" grid axis.  Ragged
    # last block is handled by Pallas directly (no jnp.pad / out[:M] copies):
    # OOB rows are undefined inside the kernel and discarded on writeback.
    grid = (pl.cdiv(M, tm),)
    return pl.pallas_call(
        cls_head_kernel,
        out_shape=jax.ShapeDtypeStruct((M, OUT_PAD), jnp.bfloat16),
        grid=grid,
        in_specs=[
            pl.BlockSpec((tm, H),            lambda i: (i, 0)),
            pl.BlockSpec((H, H1_PAD),        lambda i: (0, 0)),
            pl.BlockSpec((1, H1_PAD),        lambda i: (0, 0)),
            pl.BlockSpec((H1_PAD, OUT_PAD),  lambda i: (0, 0)),
            pl.BlockSpec((1, OUT_PAD),       lambda i: (0, 0)),
        ],
        out_specs=pl.BlockSpec((tm, OUT_PAD), lambda i: (i, 0)),
        compiler_params=pltpu.CompilerParams(
            dimension_semantics=("parallel",)),
    )(x, w1p, b1p, w2p, b2p)


def reference_head(x, w1, b1, w2, b2):
    h = jnp.maximum(x @ w1 + b1, 0.0)
    return h @ w2 + b2


if __name__ == "__main__":
    key = jax.random.PRNGKey(0)
    k_x, k_w1, k_b1, k_w2, k_b2, k_xb = jax.random.split(key, 6)

    # synthetic pooled representation in bf16 (stands in for the pretrained
    # encoder's pooled output; producer-side dtype, no standalone cast here)
    B = 8
    x = jax.random.normal(k_x, (B, H), jnp.bfloat16)

    # deterministic parameter init (PyTorch Linear-style uniform(+-1/sqrt(fan_in)))
    lim1 = 1.0 / jnp.sqrt(jnp.float32(H))
    lim2 = 1.0 / jnp.sqrt(jnp.float32(H1))
    w1 = jax.random.uniform(k_w1, (H, H1), jnp.float32, -lim1, lim1)
    b1 = jax.random.uniform(k_b1, (1, H1), jnp.float32, -lim1, lim1)
    w2 = jax.random.uniform(k_w2, (H1, NCLS), jnp.float32, -lim2, lim2)
    b2 = jax.random.uniform(k_b2, (1, NCLS), jnp.float32, -lim2, lim2)

    # pad weights once, outside the per-call path
    w1p, b1p, w2p, b2p = prepare_params(w1, b1, w2, b2)

    # --- path 1: small batch, single full-VMEM call -------------------------
    out_pad = jax.block_until_ready(dnabert2_head(x, w1p, b1p, w2p, b2p))
    logits = out_pad[:, :NCLS].astype(jnp.float32)            # slice in the consumer
    ref = reference_head(x.astype(jnp.float32), w1, b1, w2, b2)
    assert out_pad.dtype == jnp.bfloat16
    assert logits.shape == (B, NCLS)
    assert jnp.allclose(logits, ref, atol=3e-2, rtol=3e-2)
    # padding columns are exactly zero
    assert jnp.all(out_pad[:, NCLS:] == 0)

    # --- path 2: batched rows, tiled "parallel" grid, ragged last block -----
    M = 300                                                   # not a multiple of tm
    xb = jax.random.normal(k_xb, (M, H), jnp.bfloat16)
    outb = jax.block_until_ready(dnabert2_head(xb, w1p, b1p, w2p, b2p))
    refb = reference_head(xb.astype(jnp.float32), w1, b1, w2, b2)
    assert outb.shape == (M, OUT_PAD)
    assert jnp.allclose(outb[:, :NCLS].astype(jnp.float32), refb,
                        atol=3e-2, rtol=3e-2)

    print("KERNEL_OK")
</pallas_src>

<mosaic_0001>
module attributes {stable_mosaic.version = 11 : i64} {
  func.func @cls_head_kernel(%arg0: memref<8x768xbf16, #tpu.memory_space<vmem>>, %arg1: memref<768x128xbf16, #tpu.memory_space<vmem>>, %arg2: memref<1x128xf32, #tpu.memory_space<vmem>>, %arg3: memref<128x128xbf16, #tpu.memory_space<vmem>>, %arg4: memref<1x128xf32, #tpu.memory_space<vmem>>, %arg5: memref<8x128xbf16, #tpu.memory_space<vmem>>) attributes {dimension_semantics = [], scalar_prefetch = 0 : i64, scratch_operands = 0 : i64, tpu.core_type = #tpu.core_type<tc>} {
    %c0 = arith.constant 0 : index
    %c0_0 = arith.constant 0 : index
    %0 = vector.load %arg0[%c0, %c0_0] : memref<8x768xbf16, #tpu.memory_space<vmem>>, vector<8x768xbf16>
    %c0_1 = arith.constant 0 : index
    %c0_2 = arith.constant 0 : index
    %1 = vector.load %arg1[%c0_1, %c0_2] : memref<768x128xbf16, #tpu.memory_space<vmem>>, vector<768x128xbf16>
    %cst = arith.constant dense<0.000000e+00> : vector<8x128xf32>
    %2 = tpu.matmul %0, %1, %cst {dimension_numbers = #tpu.dot_dimension_numbers<[1], [0], [0], [1], [0, 0, 1, 1], [], []>} : vector<8x768xbf16>, vector<768x128xbf16>, vector<8x128xf32> -> vector<8x128xf32>
    %c0_3 = arith.constant 0 : index
    %c0_4 = arith.constant 0 : index
    %3 = vector.load %arg2[%c0_3, %c0_4] : memref<1x128xf32, #tpu.memory_space<vmem>>, vector<1x128xf32>
    %4 = vector.broadcast %3 : vector<1x128xf32> to vector<8x128xf32>
    %5 = arith.addf %2, %4 : vector<8x128xf32>
    %cst_5 = arith.constant 0.000000e+00 : f32
    %6 = vector.broadcast %cst_5 : f32 to vector<8x128xf32>
    %7 = arith.maximumf %5, %6 : vector<8x128xf32>
    %8 = arith.truncf %7 : vector<8x128xf32> to vector<8x128xbf16>
    %c0_6 = arith.constant 0 : index
    %c0_7 = arith.constant 0 : index
    %9 = vector.load %arg3[%c0_6, %c0_7] : memref<128x128xbf16, #tpu.memory_space<vmem>>, vector<128x128xbf16>
    %cst_8 = arith.constant dense<0.000000e+00> : vector<8x128xf32>
    %10 = tpu.matmul %8, %9, %cst_8 {dimension_numbers = #tpu.dot_dimension_numbers<[1], [0], [0], [1], [0, 0, 1, 1], [], []>} : vector<8x128xbf16>, vector<128x128xbf16>, vector<8x128xf32> -> vector<8x128xf32>
    %c0_9 = arith.constant 0 : index
    %c0_10 = arith.constant 0 : index
    %11 = vector.load %arg4[%c0_9, %c0_10] : memref<1x128xf32, #tpu.memory_space<vmem>>, vector<1x128xf32>
    %12 = vector.broadcast %11 : vector<1x128xf32> to vector<8x128xf32>
    %13 = arith.addf %10, %12 : vector<8x128xf32>
    %14 = arith.truncf %13 : vector<8x128xf32> to vector<8x128xbf16>
    %c0_11 = arith.constant 0 : index
    %c0_12 = arith.constant 0 : index
    %15 = vector.load %arg5[%c0_11, %c0_12] : memref<8x128xbf16, #tpu.memory_space<vmem>>, vector<8x128xbf16>
    tpu.vector_store %arg5[%c0_11, %c0_12], %14 {strides = array<i32>} : memref<8x128xbf16, #tpu.memory_space<vmem>>, vector<8x128xbf16>,
    return
  }
}

</mosaic_0001>

<bundles_post_ra>
// kernel: tpu_custom_call.1
= control target key start
LH: loop header
LB: loop body
LE: loop exit
PB: predicated region body
PF: predicated region fallthrough
CT: control target
= control target key end

     0   :  { %10 = vsyncpa [#allocation3], 0  ;;  %s1103_s0 = inlined_call_operand.hbm [shape: bf16[8,768], index: 0, kind: input, shape index: {}]   ;;  %s1104_s1 = inlined_call_operand.hbm [shape: bf16[768,128], index: 1, kind: input, shape index: {}]   ;;  %s1105_s2 = inlined_call_operand.vmem [shape: f32[1,128], index: 2, kind: input, shape index: {}]   ;;  %s1106_s3 = inlined_call_operand.hbm [shape: bf16[128,128], index: 3, kind: input, shape index: {}]   ;;  %s1107_s4 = inlined_call_operand.vmem [shape: f32[1,128], index: 4, kind: input, shape index: {}]   ;;  %s1108_s5 = inlined_call_operand.hbm [shape: bf16[8,128], index: 5, kind: output, shape index: {}]  }
   0x1   :  { %11 = vsyncpa [#allocation6], 0  ;;  %s28_s20 = sshll.u32 %s1104_s1, 4  ;;  %s29_s20 = int_to_ptr.hbm [resolvable:$true] %s28_s20 }
   0x2   :  { %12 = vsyncpa [#allocation4], 0  ;;  %s1049_s21 = smov [#allocation5]   ;;  %s18_s25 = sshll.u32 %s1103_s0, 4  ;;  %s19_s25 = int_to_ptr.hbm [resolvable:$true] %s18_s25 }
   0x3   :  { %s30_s22 = sshll.u32 %s1049_s21, 4  ;;  %s1050_s26 = smov 64   ;;  %s31_s22 = int_to_ptr.vmem [resolvable:$true] %s30_s22 }
   0x4   :  { %s1051_s27 = smov 4   ;;  %s1052_s28 = smov [#allocation2]  }
   0x5   :  { %36 = dma.hbm_to_vmem [thread:$0]  %s29_s20, 6144, %s31_s22, [#allocation6], %s1050_s26, %s1050_s26, %s1051_s27  }
   0x6   :  { %s20_s29 = sshll.u32 %s1052_s28, 4  ;;  %s43_s7 = sshll.u32 %s1106_s3, 4  ;;  %s21_s29 = int_to_ptr.vmem [resolvable:$true] %s20_s29  ;;  %s44_s7 = int_to_ptr.hbm [resolvable:$true] %s43_s7 }
   0x7   :  { %23 = dma.hbm_to_vmem [thread:$0]  %s19_s25, 384, %s21_s29, [#allocation3]  }
   0x8   :  { %s1053_s1 = smov [#allocation7]  }
   0x9   :  { %s45_s8 = sshll.u32 %s1053_s1, 4  ;;  %s46_s8 = int_to_ptr.vmem [resolvable:$true] %s45_s8 }
   0xa   :  { %51 = dma.hbm_to_vmem [thread:$0]  %s44_s7, 1024, %s46_s8, [#allocation6], %s1050_s26, %s1050_s26, %s1051_s27  }
   0xb   :  { %1043 = dma.done.wait [#allocation3], 384  }
   0xc   :  { %1044 = vsyncadd [#allocation3], 4294966912 }
   0xd   :  { %1045 = dma.done.wait [#allocation6], 7168  }
   0xe   :  { %1046 = vsyncadd [#allocation6], 4294960128  ;;  %v890_v0 = vld [vmem:[#allocation5 + $0x38] sm:$0xff]  ;;  %v889_v2 = vld [vmem:[#allocation5 + $0x30] sm:$0xff]  ;;  %s648_s14 = sshll.u32 %s1108_s5, 4  ;;  %s649_s14 = int_to_ptr.hbm [resolvable:$true] %s648_s14 }
   0xf   :  { %v898_v1 = vld [vmem:[#allocation5 + $0x78] sm:$0xff]  ;;  %478 = vmatpush.bf16.msra.mxu0 %v890_v0  ;;  %v897_v3 = vld [vmem:[#allocation5 + $0x70] sm:$0xff]  ;;  %v888_v8 = vld [vmem:[#allocation5 + $0x28] sm:$0xff] }
  0x10   :  { %491 = vmatpush.bf16.msra.mxu1 %v898_v1  ;;  %v906_v4 = vld [vmem:[#allocation5 + $0xb8] sm:$0xff]  ;;  %v905_v6 = vld [vmem:[#allocation5 + $0xb0] sm:$0xff]  ;;  %v896_v9 = vld [vmem:[#allocation5 + $0x68] sm:$0xff] }
  0x11   :  { %v914_v5 = vld [vmem:[#allocation5 + $0xf8] sm:$0xff]  ;;  %504 = vmatpush.bf16.msra.mxu2 %v906_v4  ;;  %v913_v7 = vld [vmem:[#allocation5 + $0xf0] sm:$0xff]  ;;  %v904_v10 = vld [vmem:[#allocation5 + $0xa8] sm:$0xff] }
  0x12   :  { %517 = vmatpush.bf16.msra.mxu3 %v914_v5  ;;  %v912_v11 = vld [vmem:[#allocation5 + $0xe8] sm:$0xff]  ;;  %v887_v12 = vld [vmem:[#allocation5 + $0x20] sm:$0xff]  ;;  %v886_v16 = vld [vmem:[#allocation5 + $0x18] sm:$0xff] }
  0x13   :  { %479 = vmatpush.bf16.msra.mxu0 %v889_v2  ;;  %v895_v13 = vld [vmem:[#allocation5 + $0x60] sm:$0xff]  ;;  %v894_v17 = vld [vmem:[#allocation5 + $0x58] sm:$0xff]  ;;  %v885_v20 = vld [vmem:[#allocation5 + $0x10] sm:$0xff] }
  0x14   :  { %492 = vmatpush.bf16.msra.mxu1 %v897_v3  ;;  %v903_v14 = vld [vmem:[#allocation5 + $0xa0] sm:$0xff]  ;;  %v902_v18 = vld [vmem:[#allocation5 + $0x98] sm:$0xff]  ;;  %v893_v21 = vld [vmem:[#allocation5 + $0x50] sm:$0xff] }
  0x15   :  { %505 = vmatpush.bf16.msra.mxu2 %v905_v6  ;;  %v911_v15 = vld [vmem:[#allocation5 + $0xe0] sm:$0xff]  ;;  %v910_v19 = vld [vmem:[#allocation5 + $0xd8] sm:$0xff]  ;;  %v901_v22 = vld [vmem:[#allocation5 + $0x90] sm:$0xff] }
  0x16   :  { %518 = vmatpush.bf16.msra.mxu3 %v913_v7  ;;  %v909_v23 = vld [vmem:[#allocation5 + $0xd0] sm:$0xff]  ;;  %v884_v24 = vld [vmem:[#allocation5 + $0x8] sm:$0xff]  ;;  %v883_v32 = vld [vmem:[#allocation5] sm:$0xff] }
  0x17   :  { %480 = vmatpush.bf16.msra.mxu0 %v888_v8  ;;  %v892_v25 = vld [vmem:[#allocation5 + $0x48] sm:$0xff]  ;;  %v67_v31 = vld [vmem:[#allocation2 + $0x8] sm:$0xff]  ;;  %v891_v33 = vld [vmem:[#allocation5 + $0x40] sm:$0xff] }
  0x18   :  { %493 = vmatpush.bf16.msra.mxu1 %v896_v9  ;;  %v66_v26 = vld [vmem:[#allocation2] sm:$0xff]  ;;  %v922_v34 = vld [vmem:[#allocation5 + $0x138] sm:$0xff]  ;;  %v899_v36 = vld [vmem:[#allocation5 + $0x80] sm:$0xff]  ;;  %v174_v37 = vunpack.c.l.b16 %v67_v31  ;;  %v175_v40 = vunpack.c.h.b16 %v67_v31 }
  0x19   :  { %506 = vmatpush.bf16.msra.mxu2 %v904_v10  ;;  %v900_v27 = vld [vmem:[#allocation5 + $0x88] sm:$0xff]  ;;  %v172_v28 = vunpack.c.l.b16 %v66_v26  ;;  %v173_v30 = vunpack.c.h.b16 %v66_v26  ;;  %v930_v35 = vld [vmem:[#allocation5 + $0x178] sm:$0xff]  ;;  %v907_v41 = vld [vmem:[#allocation5 + $0xc0] sm:$0xff] }
  0x1a   :  { %519 = vmatpush.bf16.msra.mxu3 %v912_v11  ;;  %v908_v29 = vld [vmem:[#allocation5 + $0xc8] sm:$0xff]  ;;  %v921_v42 = vld [vmem:[#allocation5 + $0x130] sm:$0xff]  ;;  %v180_v44 = vpack.c.b16 %v174_v37, %v174_v37  ;;  %v181_v45 = vpack.c.b16 %v175_v40, %v175_v40  ;;  %v919_v48 = vld [vmem:[#allocation5 + $0x120] sm:$0xff] }
  0x1b   :  { %481 = vmatpush.bf16.msra.mxu0 %v887_v12  ;;  %v178_v38 = vpack.c.b16 %v172_v28, %v172_v28  ;;  %v179_v39 = vpack.c.b16 %v173_v30, %v173_v30  ;;  %v929_v43 = vld [vmem:[#allocation5 + $0x170] sm:$0xff]  ;;  %v920_v46 = vld [vmem:[#allocation5 + $0x128] sm:$0xff]  ;;  %v927_v49 = vld [vmem:[#allocation5 + $0x160] sm:$0xff] }
  0x1c   :  { %494 = vmatpush.bf16.msra.mxu1 %v895_v13  ;;  %v928_v47 = vld [vmem:[#allocation5 + $0x168] sm:$0xff]  ;;  %v918_v50 = vld [vmem:[#allocation5 + $0x118] sm:$0xff]  ;;  %v917_v52 = vld [vmem:[#allocation5 + $0x110] sm:$0xff] }
  0x1d   :  { %507 = vmatpush.bf16.msra.mxu2 %v903_v14  ;;  %v926_v51 = vld [vmem:[#allocation5 + $0x158] sm:$0xff]  ;;  %v925_v53 = vld [vmem:[#allocation5 + $0x150] sm:$0xff]  ;;  %v916_v54 = vld [vmem:[#allocation5 + $0x108] sm:$0xff] }
  0x1e   :  { %520 = vmatpush.bf16.msra.mxu3 %v911_v15  ;;  %v924_v55 = vld [vmem:[#allocation5 + $0x148] sm:$0xff]  ;;  %v68_v56 = vld [vmem:[#allocation2 + $0x10] sm:$0xff]  ;;  %v915_v59 = vld [vmem:[#allocation5 + $0x100] sm:$0xff] }
  0x1f   :  { %482 = vmatpush.bf16.msra.mxu0 %v886_v16  ;;  %v176_v57 = vunpack.c.l.b16 %v68_v56  ;;  %v177_v58 = vunpack.c.h.b16 %v68_v56  ;;  %v923_v60 = vld [vmem:[#allocation5 + $0x140] sm:$0xff]  ;;  %v938_v63 = vld [vmem:[#allocation7 + $0x38] sm:$0xff]  ;;  %v937_v0 = vld [vmem:[#allocation7 + $0x30] sm:$0xff] }
  0x20   :  { %495 = vmatpush.bf16.msra.mxu1 %v894_v17  ;;  %v936_v1 = vld [vmem:[#allocation7 + $0x28] sm:$0xff]  ;;  %v935_v2 = vld [vmem:[#allocation7 + $0x20] sm:$0xff]  ;;  %v934_v3 = vld [vmem:[#allocation7 + $0x18] sm:$0xff] }
  0x21   :  { %508 = vmatpush.bf16.msra.mxu2 %v902_v18  ;;  %v182_v61 = vpack.c.b16 %v176_v57, %v176_v57  ;;  %v183_v62 = vpack.c.b16 %v177_v58, %v177_v58  ;;  %v933_v4 = vld [vmem:[#allocation7 + $0x10] sm:$0xff]  ;;  %v932_v5 = vld [vmem:[#allocation7 + $0x8] sm:$0xff]  ;;  %v931_v8 = vld [vmem:[#allocation7] sm:$0xff] }
  0x22   :  { %521 = vmatpush.bf16.msra.mxu3 %v910_v19  ;;  %v945_v13 = vld [vmem:[%s1105_s2] ss:$0 sm:$0xff]  ;;  %s1054_s2 = smov [#allocation8]  }
  0x23   :  { %483 = vmatpush.bf16.msra.mxu0 %v885_v20  ;;  %v946_v28 = vld [vmem:[%s1107_s4] ss:$0 sm:$0xff]  ;;  %s646_s11 = sshll.u32 %s1054_s2, 4  ;;  %s647_s11 = int_to_ptr.vmem [resolvable:$true] %s646_s11 }
  0x24   :  { %496 = vmatpush.bf16.msra.mxu1 %v893_v21 }
  0x25   :  { %509 = vmatpush.bf16.msra.mxu2 %v901_v22 }
  0x26   :  { %522 = vmatpush.bf16.msra.mxu3 %v909_v23 }
  0x27   :  { %484 = vmatpush.bf16.msra.mxu0 %v884_v24 }
  0x28   :  { %497 = vmatpush.bf16.msra.mxu1 %v892_v25 }
  0x29   :  { %510 = vmatpush.bf16.msra.mxu2 %v900_v27 }
  0x2a   :  { %523 = vmatpush.bf16.msra.mxu3 %v908_v29 }
  0x2b   :  { %485 = vmatpush.bf16.msra.mxu0 %v883_v32 }
  0x2c   :  { %498 = vmatpush.bf16.msra.mxu1 %v891_v33 }
  0x2d   :  { %511 = vmatpush.bf16.msra.mxu2 %v899_v36 }
  0x2e   :  { %486 = vmatmul.bf16.vlgmr.msra.gmra.mxu0 %v178_v38  ;;  %524 = vmatpush.bf16.msra.mxu3 %v907_v41 }
  0x2f   :  { %530 = vmatpush.bf16.msrb.mxu0 %v922_v34  ;;  %499 = vmatmul.bf16.vlgmr.msra.gmra.mxu1 %v179_v39 }
  0x30   :  { %543 = vmatpush.bf16.msrb.mxu1 %v930_v35  ;;  %512 = vmatmul.bf16.vlgmr.msra.gmra.mxu2 %v180_v44 }
  0x31   :  { %525 = vmatmul.bf16.vlgmr.msra.gmra.mxu3 %v181_v45  ;;  %626 = vmatpush.bf16.msrb.mxu2 %v938_v63 }
  0x33   :  { %531 = vmatpush.bf16.msrb.mxu0 %v921_v42 }
  0x34   :  { %544 = vmatpush.bf16.msrb.mxu1 %v929_v43 }
  0x35   :  { %627 = vmatpush.bf16.msrb.mxu2 %v937_v0 }
  0x37   :  { %532 = vmatpush.bf16.msrb.mxu0 %v920_v46 }
  0x38   :  { %545 = vmatpush.bf16.msrb.mxu1 %v928_v47 }
  0x39   :  { %628 = vmatpush.bf16.msrb.mxu2 %v936_v1 }
  0x3b   :  { %533 = vmatpush.bf16.msrb.mxu0 %v919_v48 }
  0x3c   :  { %546 = vmatpush.bf16.msrb.mxu1 %v927_v49 }
  0x3d   :  { %629 = vmatpush.bf16.msrb.mxu2 %v935_v2 }
  0x3f   :  { %534 = vmatpush.bf16.msrb.mxu0 %v918_v50 }
  0x40   :  { %547 = vmatpush.bf16.msrb.mxu1 %v926_v51 }
  0x41   :  { %630 = vmatpush.bf16.msrb.mxu2 %v934_v3 }
  0x43   :  { %535 = vmatpush.bf16.msrb.mxu0 %v917_v52 }
  0x44   :  { %548 = vmatpush.bf16.msrb.mxu1 %v925_v53 }
  0x45   :  { %631 = vmatpush.bf16.msrb.mxu2 %v933_v4 }
  0x47   :  { %536 = vmatpush.bf16.msrb.mxu0 %v916_v54 }
  0x48   :  { %549 = vmatpush.bf16.msrb.mxu1 %v924_v55 }
  0x49   :  { %632 = vmatpush.bf16.msrb.mxu2 %v932_v5 }
  0x4b   :  { %537 = vmatpush.bf16.msrb.mxu0 %v915_v59 }
  0x4c   :  { %550 = vmatpush.bf16.msrb.mxu1 %v923_v60 }
  0x4d   :  { %633 = vmatpush.bf16.msrb.mxu2 %v931_v8 }
  0x4e   :  { %538 = vmatmul.bf16.vlgmr.msrb.gmra.mxu0 %v182_v61 }
  0x4f   :  { %551 = vmatmul.bf16.vlgmr.msrb.gmra.mxu1 %v183_v62 }
  0xab   :  { %v487_v6 = vpop.f32.mrf.mxu0 }
  0xac   :  { %v500_v7 = vpop.f32.mrf.mxu1  ;;  %v488_v14 = vadd.f32 %v945_v13, %v487_v6 }
  0xae   :  { %v501_v17 = vadd.f32 %v500_v7, %v488_v14 }
  0xb3   :  { %v489_v9 = vpop.f32.mrf.mxu0  ;;  %v513_v11 = vpop.f32.mrf.mxu2 }
  0xb4   :  { %v502_v10 = vpop.f32.mrf.mxu1  ;;  %v526_v12 = vpop.f32.mrf.mxu3  ;;  %v514_v18 = vadd.f32 %v513_v11, %v501_v17 }
  0xb6   :  { %v527_v19 = vadd.f32 %v526_v12, %v514_v18 }
  0xbb   :  { %v515_v15 = vpop.f32.mrf.mxu2 }
  0xbc   :  { %v528_v16 = vpop.f32.mrf.mxu3 }
  0xcb   :  { %v539_v20 = vpop.f32.mrf.mxu0 }
  0xcc   :  { %v552_v21 = vpop.f32.mrf.mxu1  ;;  %v540_v22 = vadd.f32 %v539_v20, %v527_v19 }
  0xce   :  { %v553_v23 = vadd.f32 %v552_v21, %v540_v22 }
  0xd0   :  { %v556_v24 = vmax.f32 %v553_v23, 0.0 }
  0xd2   :  { %v557_v25 = vpack.c.bf16 %v556_v24, %v556_v24 }
  0xd3   :  { %v541_v26 = vpop.f32.mrf.mxu0 }
  0xd4   :  { %v554_v27 = vpop.f32.mrf.mxu1  ;;  %634 = vmatmul.bf16.vlgmr.msrb.gmra.mxu2 %v557_v25 }
 0x157   :  { %v635_v29 = vpop.f32.mrf.mxu2 }
 0x158   :  { %v636_v30 = vadd.f32 %v946_v28, %v635_v29 }
 0x15a   :  { %v639_v31 = vpack.c.bf16 %v636_v30, %v636_v30 }
 0x15c   :  { %640 = vst [vmem:[#allocation8] sm:$0xf] %v639_v31 }
 0x15d   :  { %651 = dma.vmem_to_hbm [thread:$0]  %s647_s11, 64, %s649_s14, [#allocation4]  }
 0x15f   :  { %v637_v32 = vpop.f32.mrf.mxu2 }
 0x160   :  { %1047 = dma.done.wait [#allocation4], 64  }
 0x161   :  { %1048 = vsyncadd [#allocation4], 4294967232 }
 0x162   :  { %656 = vsyncpa [#allocation3], 1 }
 0x163   :  { %657 = vsyncpa [#allocation6], 1 }
 0x164   :  { %658 = vsyncpa [#allocation4], 1 }

</bundles_post_ra>
